<compile_context>
chip_gen: v6e
topology: v6e:2x2x1
jax: 0.10.0
libtpu: 0.0.40
codegen_flags: <defaults>
</compile_context>

<pallas_src>
import jax
import jax.numpy as jnp
from jax.experimental import pallas as pl
from jax.experimental.pallas import tpu as pltpu


def _make_split_kernel(seq_len: int, batch_fold: int, n_left_blocks: int):
    """Every channel block lies wholly in one half -> a single sublane roll.

    Blocks are (batch_fold * seq_len, ct) rows of the flattened (B*T, C)
    input.  The roll wraps across folded-batch boundaries, but exactly those
    rows are the replicate-boundary rows overwritten below.
    """
    T, Bb = seq_len, batch_fold
    R = Bb * T
    shift_fwd = (R - 1) % R      # rolled[r] = x[(r + 1) % R]
    shift_bwd = 1 % R            # rolled[r] = x[(r - 1) % R]

    def kernel(x_ref, gate_ref, o_ref):
        j = pl.program_id(0)                      # channel-block index
        x = x_ref[...].astype(jnp.float32)        # (R, ct)
        gate = gate_ref[...]                      # (1, ct) f32, broadcasts

        @pl.when(j < n_left_blocks)
        def _():
            xs = pltpu.roll(x, shift_fwd, axis=0)            # x[t + 1]
            o_ref[...] = (x + gate * (xs - x)).astype(o_ref.dtype)
            # Replicate boundary: at t = T-1, shifted == x  =>  out == x.
            for bi in range(Bb):
                r = bi * T + T - 1
                o_ref[pl.ds(r, 1), :] = x_ref[pl.ds(r, 1), :]

        @pl.when(j >= n_left_blocks)
        def _():
            xs = pltpu.roll(x, shift_bwd, axis=0)            # x[t - 1]
            o_ref[...] = (x + gate * (xs - x)).astype(o_ref.dtype)
            # Replicate boundary: at t = 0, shifted == x  =>  out == x.
            for bi in range(Bb):
                r = bi * T
                o_ref[pl.ds(r, 1), :] = x_ref[pl.ds(r, 1), :]

    return kernel


def _make_mixed_kernel(seq_len: int, batch_fold: int, c_half: int, ct: int):
    """Channel block may straddle the left/right boundary: two rolls + select.

    The block's channel offset comes from program_id, so this works for any
    lane-aligned channel tiling (C//2 need not be a multiple of ct)."""
    T, Bb = seq_len, batch_fold
    R = Bb * T
    shift_fwd = (R - 1) % R
    shift_bwd = 1 % R

    def kernel(x_ref, gate_ref, o_ref):
        c_off = pl.program_id(0) * ct             # block's absolute channel offset
        x = x_ref[...].astype(jnp.float32)        # (R, ct)
        gate = gate_ref[...]                      # (1, ct)
        # (1, ct) mask: True -> channel in the left half -> forward (+1) shift.
        left = (jax.lax.broadcasted_iota(jnp.int32, (1, ct), 1) + c_off) < c_half
        xs = jnp.where(left,
                       pltpu.roll(x, shift_fwd, axis=0),
                       pltpu.roll(x, shift_bwd, axis=0))
        out = x + gate * (xs - x)
        o_ref[...] = out.astype(o_ref.dtype)
        # Replicate boundary fix-up: left half keeps x at t = T-1, right half
        # keeps x at t = 0 (the roll wrapped exactly there).
        for bi in range(Bb):
            r_last = bi * T + T - 1
            r_first = bi * T
            o_ref[pl.ds(r_last, 1), :] = jnp.where(
                left,
                x_ref[pl.ds(r_last, 1), :],
                out[r_last:r_last + 1, :].astype(o_ref.dtype))
            o_ref[pl.ds(r_first, 1), :] = jnp.where(
                left,
                out[r_first:r_first + 1, :].astype(o_ref.dtype),
                x_ref[pl.ds(r_first, 1), :])

    return kernel


def _pick_channel_tile(B: int, T: int, C: int, itemsize: int, budget: int) -> int:
    """Lane-aligned channel tile dividing C (whole C if C is not 128-aligned)."""
    if C % 128 != 0:
        return C                       # tiny / unaligned d_model: one block
    c_half = C // 2
    candidates = (4096, 2048, 1024, 512, 256, 128)
    # Prefer a tile that also divides C//2 (every block wholly in one half ->
    # cheaper single-roll kernel); otherwise any lane-aligned divisor of C.
    for group in (c_half, C):
        for cand in candidates:
            if group % cand != 0:
                continue
            if T * cand * itemsize > budget:
                continue
            if B == 1 and cand == C:   # keep >= 2 grid steps when B == 1
                continue
            return cand
    return 128


def _pick_batch_fold(B: int, T: int, ct: int, n_ct: int, itemsize: int,
                     budget: int, sublane: int) -> int:
    """How many whole batches to fold into one row block of the (B*T, C) view."""
    valid = [c for c in range(1, B + 1)
             if B % c == 0 and ((c * T) % sublane == 0 or c == B)]
    min_steps = 2 if B * n_ct >= 2 else 1
    good = [c for c in valid
            if c * T * ct * itemsize <= budget and (B // c) * n_ct >= min_steps]
    if good:
        return max(good)
    return min(valid)


def bishift(x: jax.Array, mu: jax.Array) -> jax.Array:
    """x: (B, T, C); mu: (1, 1, C).  Returns x + sigmoid(mu) * (x_shifted - x)."""
    B, T, C = x.shape
    assert mu.shape == (1, 1, C)
    if T == 1:
        # Replicate padding makes both shifts the identity: out == x exactly.
        return x

    c_half = C // 2
    itemsize = jnp.dtype(x.dtype).itemsize
    sublane = max(8, 32 // max(itemsize, 1))   # 8 for f32, 16 for bf16, 32 for 8-bit

    phys_vmem = 64 << 20                       # conservative (v7x per-core VMEM)
    try:
        phys_vmem = int(getattr(pltpu.get_tpu_info(), "vmem_capacity_bytes",
                                phys_vmem))
    except Exception:
        pass
    # Bigger blocks on v5e/v6e (128 MiB VMEM); tighter cap on v7x (64 MiB).
    budget = (8 << 20) if phys_vmem >= (96 << 20) else (4 << 20)

    ct = _pick_channel_tile(B, T, C, itemsize, budget)
    n_ct = C // ct
    bb = _pick_batch_fold(B, T, ct, n_ct, itemsize, budget, sublane)
    n_bb = B // bb
    rows = bb * T

    # Precompute the gate once in f32 (O(C) work, shared by every element).
    gate = jax.nn.sigmoid(mu.astype(jnp.float32)).reshape(1, C)

    if c_half % ct == 0:
        kernel = _make_split_kernel(T, bb, c_half // ct)
    else:
        kernel = _make_mixed_kernel(T, bb, c_half, ct)

    # Explicit scoped-VMEM limit sized from the actual block: 2x double-
    # buffered in + out, generous allowance for in-kernel f32 temporaries,
    # the gate, and headroom.  Clamped to the physical capacity.
    block_bytes = rows * ct * itemsize
    vmem_need = 4 * block_bytes + 8 * rows * ct * 4 + 8 * C + (4 << 20)
    vmem_limit = int(min(max(vmem_need, 32 << 20), phys_vmem))

    x2d = x.reshape(B * T, C)
    out2d = pl.pallas_call(
        kernel,
        out_shape=jax.ShapeDtypeStruct((B * T, C), x.dtype),
        grid=(n_ct, n_bb),
        in_specs=[
            pl.BlockSpec((rows, ct), lambda j, g: (g, j)),
            # Gate block index is constant along the inner (g) axis, so its
            # tiny DMA is only issued when the channel block changes.
            pl.BlockSpec((1, ct), lambda j, g: (0, j)),
        ],
        out_specs=pl.BlockSpec((rows, ct), lambda j, g: (g, j)),
        compiler_params=pltpu.CompilerParams(
            dimension_semantics=("parallel", "parallel"),
            vmem_limit_bytes=vmem_limit,
        ),
    )(x2d, gate)
    return out2d.reshape(B, T, C)


def bishift_ref(x: jax.Array, mu: jax.Array) -> jax.Array:
    """Plain-JAX reference mirroring the PyTorch forward."""
    c_half = x.shape[-1] // 2
    x_left = jnp.concatenate([x[:, 1:, :], x[:, -1:, :]], axis=1)
    x_right = jnp.concatenate([x[:, :1, :], x[:, :-1, :]], axis=1)
    x_shifted = jnp.concatenate(
        [x_left[:, :, :c_half], x_right[:, :, c_half:]], axis=2)
    return x + jax.nn.sigmoid(mu) * (x_shifted - x)


if __name__ == "__main__":
    key = jax.random.PRNGKey(0)
    k = jax.random.split(key, 10)

    tests = []
    # 1) Module-consistent small shape (mu init = zeros): whole-C mixed kernel.
    tests.append((jax.random.normal(k[0], (2, 8, 32), jnp.float32),
                  jnp.zeros((1, 1, 32), jnp.float32), 1e-5))
    # 2) Lane-aligned halves: tiled split kernel (ct=128) + batch folding.
    tests.append((jax.random.normal(k[1], (2, 8, 256), jnp.float32),
                  0.1 * jax.random.normal(k[2], (1, 1, 256), jnp.float32), 1e-5))
    # 3) C multiple of 128 but C//2 not: generalized mixed kernel with
    #    per-block channel offsets (middle block straddles the boundary).
    tests.append((jax.random.normal(k[3], (2, 8, 384), jnp.float32),
                  0.1 * jax.random.normal(k[4], (1, 1, 384), jnp.float32), 1e-5))
    # 4) Larger batch: exercises multi-batch fold fix-up loop in split kernel.
    tests.append((jax.random.normal(k[5], (4, 8, 256), jnp.float32),
                  0.1 * jax.random.normal(k[6], (1, 1, 256), jnp.float32), 1e-5))
    # 5) bf16 input with f32 gate/blend, cast only at the store.
    tests.append((jax.random.normal(k[7], (2, 16, 256), jnp.float32
                                    ).astype(jnp.bfloat16),
                  0.1 * jax.random.normal(k[8], (1, 1, 256), jnp.float32), 2e-2))

    for x, mu, tol in tests:
        out = jax.block_until_ready(bishift(x, mu))
        ref = bishift_ref(x.astype(jnp.float32), mu)
        assert out.shape == x.shape and out.dtype == x.dtype
        assert jnp.allclose(out.astype(jnp.float32), ref, atol=tol, rtol=tol), (
            x.shape, x.dtype)

    print("KERNEL_OK")
</pallas_src>

<mosaic_0001>
module attributes {stable_mosaic.version = 11 : i64} {
  func.func @kernel(%arg0: i32, %arg1: i32, %arg2: memref<8x32xf32, #tpu.memory_space<vmem>>, %arg3: memref<1x32xf32, #tpu.memory_space<vmem>>, %arg4: memref<8x32xf32, #tpu.memory_space<vmem>>) attributes {dimension_semantics = [#tpu.dimension_semantics<parallel>, #tpu.dimension_semantics<parallel>], iteration_bounds = array<i64: 1, 2>, scalar_prefetch = 0 : i64, scratch_operands = 0 : i64, tpu.core_type = #tpu.core_type<tc>, window_params = [{transform_indices = @transform_0, window_bounds = array<i64: 8, 32>}, {transform_indices = @transform_1, window_bounds = array<i64: 1, 32>}, {transform_indices = @transform_2, window_bounds = array<i64: 8, 32>}]} {
    %c32_i32 = arith.constant 32 : i32
    %0 = arith.muli %arg0, %c32_i32 : i32
    %c0 = arith.constant 0 : index
    %c0_0 = arith.constant 0 : index
    %1 = vector.load %arg2[%c0, %c0_0] : memref<8x32xf32, #tpu.memory_space<vmem>>, vector<8x32xf32>
    %c0_1 = arith.constant 0 : index
    %c0_2 = arith.constant 0 : index
    %2 = vector.load %arg3[%c0_1, %c0_2] : memref<1x32xf32, #tpu.memory_space<vmem>>, vector<1x32xf32>
    %3 = tpu.iota {dimensions = array<i32: 1>} : vector<1x32xi32>
    %4 = vector.broadcast %0 : i32 to vector<1x32xi32>
    %5 = arith.addi %3, %4 : vector<1x32xi32>
    %c16_i32 = arith.constant 16 : i32
    %6 = vector.broadcast %c16_i32 : i32 to vector<1x32xi32>
    %7 = arith.cmpi slt, %5, %6 : vector<1x32xi32>
    %c7_i32 = arith.constant 7 : i32
    %8 = tpu.dynamic_rotate %1 by %c7_i32 dim 0 : vector<8x32xf32>, i32 -> vector<8x32xf32>
    %c1_i32 = arith.constant 1 : i32
    %9 = tpu.dynamic_rotate %1 by %c1_i32 dim 0 : vector<8x32xf32>, i32 -> vector<8x32xf32>
    %10 = vector.shape_cast %7 : vector<1x32xi1> to vector<1x32xi1>
    %11 = vector.broadcast %10 : vector<1x32xi1> to vector<8x32xi1>
    %12 = arith.select %11, %8, %9 : vector<8x32xi1>, vector<8x32xf32>
    %13 = arith.subf %12, %1 : vector<8x32xf32>
    %14 = vector.broadcast %2 : vector<1x32xf32> to vector<8x32xf32>
    %15 = arith.mulf %14, %13 : vector<8x32xf32>
    %16 = arith.addf %1, %15 : vector<8x32xf32>
    %c0_3 = arith.constant 0 : index
    %c0_4 = arith.constant 0 : index
    %17 = vector.load %arg4[%c0_3, %c0_4] : memref<8x32xf32, #tpu.memory_space<vmem>>, vector<8x32xf32>
    tpu.vector_store %arg4[%c0_3, %c0_4], %16 {strides = array<i32>} : memref<8x32xf32, #tpu.memory_space<vmem>>, vector<8x32xf32>,
    %c7 = arith.constant 7 : index
    %c0_5 = arith.constant 0 : index
    %18 = vector.load %arg2[%c7, %c0_5] : memref<8x32xf32, #tpu.memory_space<vmem>>, vector<1x32xf32>
    %19 = vector.extract_strided_slice %16 {offsets = [7, 0], sizes = [1, 32], strides = [1, 1]} : vector<8x32xf32> to vector<1x32xf32>
    %20 = arith.select %7, %18, %19 : vector<1x32xi1>, vector<1x32xf32>
    %c7_6 = arith.constant 7 : index
    %c0_7 = arith.constant 0 : index
    %21 = vector.load %arg4[%c7_6, %c0_7] : memref<8x32xf32, #tpu.memory_space<vmem>>, vector<1x32xf32>
    tpu.vector_store %arg4[%c7_6, %c0_7], %20 {strides = array<i32>} : memref<8x32xf32, #tpu.memory_space<vmem>>, vector<1x32xf32>,
    %22 = vector.extract_strided_slice %16 {offsets = [0, 0], sizes = [1, 32], strides = [1, 1]} : vector<8x32xf32> to vector<1x32xf32>
    %c0_8 = arith.constant 0 : index
    %c0_9 = arith.constant 0 : index
    %23 = vector.load %arg2[%c0_8, %c0_9] : memref<8x32xf32, #tpu.memory_space<vmem>>, vector<1x32xf32>
    %24 = arith.select %7, %22, %23 : vector<1x32xi1>, vector<1x32xf32>
    %c0_10 = arith.constant 0 : index
    %c0_11 = arith.constant 0 : index
    %25 = vector.load %arg4[%c0_10, %c0_11] : memref<8x32xf32, #tpu.memory_space<vmem>>, vector<1x32xf32>
    tpu.vector_store %arg4[%c0_10, %c0_11], %24 {strides = array<i32>} : memref<8x32xf32, #tpu.memory_space<vmem>>, vector<1x32xf32>,
    return
  }
  func.func @transform_0(%arg0: i32, %arg1: i32) -> (i32, i32) {
    %c0_i32 = arith.constant 0 : i32
    return %arg1, %arg0 : i32, i32
  }
  func.func @transform_1(%arg0: i32, %arg1: i32) -> (i32, i32) {
    %c0_i32 = arith.constant 0 : i32
    %c0_i32_0 = arith.constant 0 : i32
    return %c0_i32, %arg0 : i32, i32
  }
  func.func @transform_2(%arg0: i32, %arg1: i32) -> (i32, i32) {
    %c0_i32 = arith.constant 0 : i32
    return %arg1, %arg0 : i32, i32
  }
}

</mosaic_0001>

<bundles_post_ra>
// kernel: tpu_custom_call.1
= control target key start
LH: loop header
LB: loop body
LE: loop exit
PB: predicated region body
PF: predicated region fallthrough
CT: control target
= control target key end

     0   :  { %7 = vsyncpa [#allocation3], 0  ;;  %s681_s0 = inlined_call_operand.hbm [shape: f32[16,32], index: 0, kind: input, shape index: {}]   ;;  %s682_s1 = inlined_call_operand.vmem [shape: f32[1,32], index: 1, kind: input, shape index: {}]   ;;  %s683_s2 = inlined_call_operand.hbm [shape: f32[16,32], index: 2, kind: output, shape index: {}]  }
   0x1   :  { %9 = vsyncpa [#allocation3 + $0x1], 0 }
   0x2   :  { %10 = vsyncpa [#allocation4], 0 }
   0x3   :  { %12 = vsyncpa [#allocation4 + $0x1], 0  ;;  %s535_s9 = smov 0   ;;  %s537_s10 = smov 0  }
   0x4   :  { %s539_s11 = smov 0   ;;  %s541_s12 = smov 0  }
   0x5   :  { %s543_s13 = smov 0   ;;  %s545_s14 = smov 0  }
   0x6 LB: > { %s331_s15 = sadd.s32 4294967295, %s516_s14   ;;  %s332_s16 = sadd.s32 4294967294, %s516_s14   ;;  %s516_s14 = sphi %s545_s14, %s18_s14   ;;  %s512_s13 = sphi %s543_s13, %s695_s13   ;;  %s508_s12 = sphi %s541_s12, %s694_s12   ;;  %s504_s11 = sphi %s539_s11, %s693_s11   ;;  %s500_s10 = sphi %s537_s10, %s692_s10   ;;  %s496_s9 = sphi %s535_s9, %s691_s9  }
   0x7   : > { %s27_s17 = sadd.s32 1, %s512_s13  ;;  %s39_s18 = sadd.s32 1, %s504_s11 }
   0x8   : > { %p28_p0 = scmp.ge.s32.totalorder %s27_s17, 2  ;;  %p46_p1 = scmp.ne.s32.totalorder %s504_s11, %s500_s10 }
   0x9   : > { %p47_p2 = scmp.eq.s32.totalorder %s516_s14, 0  ;;  %p52_p3 = scmp.ne.s32.totalorder %s500_s10, %s496_s9 }
   0xa   : > { %s697_s17 = smov (%p28_p0, %s27_s17), 0  ;;  %p53_p5 = scmp.eq.s32.totalorder %s331_s15, 0 }
   0xb   : > { %p576_p4 = por %p47_p2, %p46_p1  ;;  %s34_s20 = ssub.s32 %s512_s13, %s697_s17 }
   0xc   : > { %p104_p6 = scmp.eq.s32.totalorder %s331_s15, 1  ;;  %p37_p7 = scmp.eq.s32.totalorder %s34_s20, 0 }
   0xd   : > { %p582_p8 = por %p53_p5, %p52_p3  ;;  %p110_p10 = scmp.eq.s32.totalorder %s332_s16, 1 }
   0xe   : > { %p586_p9 = por %p104_p6, %p46_p1  ;;  %p358_p13 = scmp.lt.s32.totalorder %s516_s14, 2 }
   0xf   : > { %s591_s23 = scalar_select %p37_p7, %s504_s11, %s39_s18  }
  0x10   : > { %p593_p11 = por %p110_p10, %p52_p3  ;;  %s136_s25 = sand.u32 1, %s504_s11  }
  0x11   : > { %s336_s26 = sshll.u32 %s136_s25, 3  ;;  %s337_s27 = sshll.u32 %s512_s13, 7 }
  0x12   : > { %s687_s24 = scalar_select %p593_p11, 1, 0 }
  0x13   : > { %s146_s30 = scalar_lea.hbm %s681_s0, %s337_s27  ;;  %s140_s3 = scalar_lea.vmem [#allocation2], %s336_s26 }
  0x14   : > { %s148_s4 = sshll.u32 %s140_s3, 4  ;;  %p606_p0 = pnand %p358_p13, %p576_p4  ;;  %s149_s4 = int_to_ptr.vmem [resolvable:$true] %s148_s4 }
  0x15   : > { %p338_p1 = scmp.ge.s32.totalorder %s516_s14, 1  ;;  %p153_p2 = scmp.lt.s32.totalorder %s516_s14, 3 }
  0x16   : > { %s137_s6 = scalar_lea.sflag [#allocation3], %s136_s25  ;;  %p410_p3 = pneg %p606_p0 }
  0x17   : > { %s421_s7 = scalar_lea.vmem %s149_s4, 128  ;;  %s518_s8 = smov [#allocation2]  }
  0x18   : > { %p422_p5 = scmp.ne.s32.totalorder %s149_s4, %s421_s7  ;;  %s426_s15 = sshll.u32 %s518_s8, 4  ;;  %s427_s15 = int_to_ptr.vmem [resolvable:$false] %s426_s15 }
  0x19   : > { %s428_s16 = scalar_lea.vmem %s427_s15, 256  ;;  %p429_p10 = scmp.lt.s32.totalorder %s149_s4, %s427_s15 }
  0x1a   : > { %p424_p6 = pnand %p422_p5, %p410_p3  ;;  %p430_p12 = scmp.lt.s32.totalorder %s428_s16, %s421_s7 }
  0x1c   : > { %p425_p7 = pneg %p424_p6  ;;  %p431_p4 = por %p430_p12, %p429_p10 }
  0x1e   : > { %p432_p13 = pnand %p431_p4, %p425_p7 }
  0x20   : > { %435 = shalt.err (!%p432_p13)
}
  0x21   : > { %353 = dma.hbm_to_vmem [thread:$0]  (!%p606_p0), %s146_s30, 128, %s149_s4, %s137_s6  }
  0x22   : > { %p154_p11 = pnand %p338_p1, %p153_p2 }
  0x23   : > { %s621_s18 = sand.u32 (!%p154_p11), 1, %s500_s10  }
  0x24   : > { %157 = sbr.rel (%p154_p11) target bundleno = 70 (0x46), region = 28  ;;  %s339_s19 = sshll.u32 (!%p154_p11), %s621_s18, 3 }
  0x25   : > { %s160_s20 = scalar_lea.sflag (!%p154_p11), [#allocation3], %s621_s18  ;;  %s163_s25 = scalar_lea.vmem (!%p154_p11), [#allocation2], %s339_s19 }
  0x29   : > { %487 = dma.done.wait (%p582_p8), %s160_s20, 128  }
  0x2a   : > { %489 = vsyncadd (%p582_p8), %s160_s20, 4294967168  ;;  %v193_v0 = vlaneseq  ;;  %v191_v2 = vld [vmem:[%s163_s25] sm:$0xff]  ;;  %vm212_vm1 = vcmask 261120   ;;  %s186_s21 = scalar_lea.vmem [#allocation5], %s339_s19  ;;  %vm219_vm2 = vcmask 253952   ;;  %s343_s29 = sshll.u32 %s508_s12, 7 }
  0x2b   : > { %v198_v3 = vrot.slane %v191_v2, 1  ;;  %v199_v4 = vrot.slane %v191_v2, 7  ;;  %v341_v5 = vld [vmem:[%s682_s1] ss:$0 sm:$0xff]  ;;  %s239_s28 = sshll.u32 %s186_s21, 4  ;;  %s237_s4 = scalar_lea.hbm %s683_s2, %s343_s29  ;;  %s635_s28 = int_to_ptr.vmem [resolvable:$true] %s239_s28 }
  0x2c   : > { %v194_v1 = vand.u32 127, %v193_v0  ;;  %v221_v9 = vld [vmem:[%s163_s25] sm:$0x1]  ;;  %v214_v11 = vld [vmem:[%s163_s25 + $0x7] sm:$0x1]  ;;  %s225_s5 = scalar_lea.sflag [#allocation4], %s621_s18 }
  0x2d   : > { %s436_s12 = scalar_lea.vmem %s635_s28, 128  ;;  %s519_s6 = smov [#allocation5]  }
  0x2e   : > { %vm197_vm0 = vcmp.lt.s32.totalorder %v194_v1, 16  ;;  %p437_p8 = scmp.ne.s32.totalorder %s635_s28, %s436_s12  ;;  %s440_s7 = sshll.u32 %s519_s6, 4  ;;  %s441_s7 = int_to_ptr.vmem [resolvable:$false] %s440_s7 }
  0x2f   : > { %v202_v6 = vsel %vm197_vm0, %v198_v3, %v199_v4  ;;  %s442_s8 = scalar_lea.vmem %s441_s7, 256  ;;  %p443_p0 = scmp.lt.s32.totalorder %s635_s28, %s441_s7 }
  0x30   : > { %v203_v7 = vsub.f32 %v202_v6, %v191_v2  ;;  %p438_p11 = pnand %p437_p8, %p586_p9  ;;  %p444_p1 = scmp.lt.s32.totalorder %s442_s8, %s436_s12 }
  0x32   : > { %v210_v8 = vmul.f32 %v341_v5, %v203_v7  ;;  %p439_p12 = pneg %p438_p11  ;;  %p445_p2 = por %p444_p1, %p443_p0 }
  0x34   : > { %v211_v10 = vadd.f32 %v210_v8, %v191_v2  ;;  %p446_p3 = pnand %p445_p2, %p439_p12 }
  0x36   : > { %213 = vst.msk [vmem:[%s186_s21] sm:$0xff] %vm212_vm1, %v211_v10  ;;  %v216_v12 = vrot.slane %v211_v10, 7  ;;  %v222_v13 = vsel %vm197_vm0, %v211_v10, %v221_v9 }
  0x37   : > { %223 = vst.msk [vmem:[%s186_s21] sm:$0x1] %vm219_vm2, %v222_v13 }
  0x38   : > { %v218_v14 = vsel %vm197_vm0, %v214_v11, %v216_v12 }
  0x39   : > { %220 = vst.msk [vmem:[%s186_s21 + $0x7] sm:$0x1] %vm219_vm2, %v218_v14 }
  0x3a   : > { %449 = shalt.err (!%p446_p3)
}
  0x3b   : > { %s450_s15 = scalar_lea.hbm %s237_s4, 128  ;;  %s454_s19 = scalar_lea.hbm %s683_s2, 256 }
  0x3c   : > { %p451_p5 = scmp.ne.s32.totalorder %s237_s4, %s450_s15  ;;  %p455_p10 = scmp.lt.s32.totalorder %s237_s4, %s683_s2 }
  0x3d   : > { %p456_p4 = scmp.lt.s32.totalorder %s454_s19, %s450_s15 }
  0x3e   : > { %p452_p6 = pnand %p451_p5, %p586_p9 }
  0x3f   : > { %p457_p13 = por %p456_p4, %p455_p10 }
  0x40   : > { %p453_p7 = pneg %p452_p6 }
  0x42   : > { %p458_p8 = pnand %p457_p13, %p453_p7 }
  0x44   : > { %461 = shalt.err (!%p458_p8)
}
  0x45   : > { %348 = dma.vmem_to_hbm [thread:$0]  (%p586_p9), %s635_s28, 128, %s237_s4, %s225_s5  }
  0x46 PF: > { %s251_s26 = sand.u32 1, %s496_s9   ;;  %p689_p11 = scmp.ne.s32.totalorder %s687_s24, 0 }
  0x47   : > { %p690_p12 = scmp.ge.s32.totalorder %s516_s14, 2  ;;  %s252_s27 = scalar_lea.sflag [#allocation4], %s251_s26 }
  0x49   : > { %p355_p0 = pnand %p690_p12, %p689_p11 }
  0x4b   : > { %p356_p1 = pneg %p355_p0 }
  0x4d   : > { %491 = dma.done.wait (%p356_p1), %s252_s27, 128  }
  0x4e   : > { %493 = vsyncadd (%p356_p1), %s252_s27, 4294967168  ;;  %s18_s14 = sadd.s32 1, %s516_s14   ;;  %s691_s9 = smov %s500_s10 }
  0x4f   : > { %p15_p2 = scmp.ge.s32.totalorder %s18_s14, 4   ;;  %s692_s10 = smov %s504_s11 }
  0x50   : > { %s693_s11 = smov %s591_s23  ;;  %s694_s12 = smov %s512_s13 }
  0x51   : > { %s695_s13 = smov %s697_s17  ;;  %17 = sbr.rel (!%p15_p2) target bundleno = 6 (0x6), region = 76 }
  0x56   :  { %257 = vsyncpa [#allocation3], 1 }
  0x57   :  { %259 = vsyncpa [#allocation3 + $0x1], 1 }
  0x58   :  { %260 = vsyncpa [#allocation4], 1 }
  0x59   :  { %262 = vsyncpa [#allocation4 + $0x1], 1 }

</bundles_post_ra>
